<compile_context>
chip_gen: v5e
topology: v5e:2x2
jax: 0.10.0
libtpu: 0.0.40
codegen_flags: <defaults>
</compile_context>

<pallas_src>
import jax
import jax.numpy as jnp
from jax.experimental import pallas as pl
from jax.experimental.pallas import tpu as pltpu

N_CHUNKS = 6  # linear_node produces 6 * out_feats features, gated per-edge


def _round_up(x, m):
    return (x + m - 1) // m * m


# ---------------------------------------------------------------------------
# Pass 0: fused node linear. Runs exactly once per node tile (not per node x edge
# tile like before). Produces:
#   gather_slab [N_pad, 6*op + 128] bf16 : 6 padded msg chunks + 128-lane norm chunk
#   self_slab   [N_pad, op]         f32  : linear_self(h)
# ---------------------------------------------------------------------------
def node_linear_kernel(h_ref, norm_ref, w_msg_ref, b_msg_ref, w_self_ref, b_self_ref,
                       gather_ref, self_ref):
    msg_w = w_msg_ref.shape[1]                       # 6*op
    norm_w = gather_ref.shape[1] - msg_w             # 128

    hm = jnp.dot(h_ref[...], w_msg_ref[...],
                 preferred_element_type=jnp.float32) + b_msg_ref[...]
    gather_ref[:, :msg_w] = hm.astype(jnp.bfloat16)
    # src-norm broadcast to a lane-dense 128-wide chunk so the S-gather matmul also
    # produces norm[src] (no 1-lane gathers downstream).
    gather_ref[:, msg_w:] = jnp.broadcast_to(
        norm_ref[...], (norm_ref.shape[0], norm_w)).astype(jnp.bfloat16)

    self_ref[...] = jnp.dot(h_ref[...], w_self_ref[...],
                            preferred_element_type=jnp.float32) + b_self_ref[...]


# ---------------------------------------------------------------------------
# Pass 1: per-edge messages.  grid = (edge_tiles, src_node_tiles)
#   acc   += S_tile(bf16) @ gather_slab_tile(bf16)        (reduction over src tiles)
#   msg    = sum_c [ deg_c * w_edge_c + gate_c * chunk_c ]  (VPU, once per edge tile)
#   msg   *= norm[src] ; msg -> bf16 HBM
# ---------------------------------------------------------------------------
def edge_message_kernel(s_ref, gather_ref, deg_ref, w_edge_ref, msg_ref, acc_ref):
    op = msg_ref.shape[-1]
    s_idx = pl.program_id(1)           # src-node-tile (reduction) index — top level only
    n_src = pl.num_programs(1)

    @pl.when(s_idx == 0)
    def _init():
        acc_ref[...] = jnp.zeros_like(acc_ref)

    # Gather hn[src] (+ norm[src]) for this edge tile: bf16 MXU matmul, f32 accumulate.
    acc_ref[...] += jnp.dot(s_ref[...], gather_ref[...],
                            preferred_element_type=jnp.float32)

    @pl.when(s_idx == n_src - 1)
    def _finalize():
        deg = deg_ref[...]                                    # [te, 6] f32
        gathered = acc_ref[...]                               # [te, 6*op + 128] f32
        msg = jnp.zeros((deg.shape[0], op), jnp.float32)
        for c in range(N_CHUNKS):
            d_c = deg[:, c:c + 1]                             # [te, 1]
            gate_c = (d_c > 0.0).astype(jnp.float32)          # [te, 1]
            # h_degrees contribution as a VPU FMA (K=6 MXU pass would be nearly empty)
            # plus the gated gathered source-message chunk.
            msg = msg + d_c * w_edge_ref[c:c + 1, :] \
                      + gate_c * gathered[:, c * op:(c + 1) * op]
        msg = msg * gathered[:, N_CHUNKS * op:N_CHUNKS * op + 1]   # * norm[src]
        msg_ref[...] = msg.astype(jnp.bfloat16)


# ---------------------------------------------------------------------------
# Pass 2: scatter-add to destination nodes + node_apply.
#   grid = (node_tiles, edge_tiles); acc += D_tile^T @ msg_tile (bf16 MXU, f32 acc)
#   finalize: relu(acc * norm[dst] + self + bias) -> lane-dense f32 store
# ---------------------------------------------------------------------------
def scatter_apply_kernel(d_ref, msg_ref, self_ref, norm_ref, bias_ref, out_ref, acc_ref):
    k = pl.program_id(1)               # edge-tile (reduction) index — top level only
    n_k = pl.num_programs(1)

    @pl.when(k == 0)
    def _init():
        acc_ref[...] = jnp.zeros_like(acc_ref)

    # acc[n, f] += sum_e D[e, n] * msg[e, f]   (contract the edge axis of both)
    acc_ref[...] += jax.lax.dot_general(
        d_ref[...], msg_ref[...],
        dimension_numbers=(((0,), (0,)), ((), ())),
        preferred_element_type=jnp.float32)

    @pl.when(k == n_k - 1)
    def _finalize():
        h_out = acc_ref[...] * norm_ref[...] + self_ref[...] + bias_ref[...]
        out_ref[...] = jnp.maximum(h_out, 0.0)                # ReLU activation


# ---------------------------------------------------------------------------
# Host wrapper
# ---------------------------------------------------------------------------
def gcn_layer_forward(h, degrees, norm, src, dst, params,
                      *, node_tile=256, edge_tile=512):
    """h: [N, in_feats] f32; degrees: [E, 6] f32; norm: [N, 1] f32; src/dst: [E] int32."""
    assert node_tile % 128 == 0 and edge_tile % 128 == 0
    N, in_feats = h.shape
    E = src.shape[0]
    out_feats = params["w_self"].shape[1]
    op = _round_up(out_feats, 128)                 # lane-dense padded feature width

    tn = min(node_tile, _round_up(N, 128))
    te = min(edge_tile, _round_up(E, 128))
    n_pad = _round_up(N, tn)
    e_pad = _round_up(E, te)
    slab_w = N_CHUNKS * op + 128                   # 6 msg chunks + 128-lane norm chunk

    # ---- host-side packing: pure layout glue, no math beyond zero-padding ----
    def pad_chunks(x, n_chunks):                   # pad each out_feats chunk to op lanes
        x = x.reshape(x.shape[0], n_chunks, out_feats)
        x = jnp.pad(x, ((0, 0), (0, 0), (0, op - out_feats)))
        return x.reshape(x.shape[0], n_chunks * op)

    w_msg = pad_chunks(params["w_node"], N_CHUNKS)           # [in, 6*op]
    b_msg = pad_chunks(params["b_node"], N_CHUNKS)           # [1, 6*op]
    w_self = pad_chunks(params["w_self"], 1)                 # [in, op]
    b_self = pad_chunks(params["b_self"], 1)                 # [1, op]
    w_edge = pad_chunks(params["w_edge"], 1)                 # [6, op]
    bias = pad_chunks(params["bias"], 1)                     # [1, op]

    h_p = jnp.pad(h, ((0, n_pad - N), (0, 0)))
    norm_p = jnp.pad(norm, ((0, n_pad - N), (0, 0)))
    deg_p = jnp.pad(degrees, ((0, e_pad - E), (0, 0)))
    # padded edges get id -1 -> all-zero one-hot rows -> contribute nothing
    src_p = jnp.pad(src, (0, e_pad - E), constant_values=-1)
    dst_p = jnp.pad(dst, (0, e_pad - E), constant_values=-1)

    # Dense incidence in bf16 (0/1 exact); stays bf16 on the MXU.
    s_mat = jax.nn.one_hot(src_p, n_pad, dtype=jnp.bfloat16)   # [E_pad, N_pad]
    d_mat = jax.nn.one_hot(dst_p, n_pad, dtype=jnp.bfloat16)   # [E_pad, N_pad]

    # ---------------- pass 0: fused node linear (once per node tile) ----------------
    gather_slab, self_slab = pl.pallas_call(
        node_linear_kernel,
        out_shape=(jax.ShapeDtypeStruct((n_pad, slab_w), jnp.bfloat16),
                   jax.ShapeDtypeStruct((n_pad, op), jnp.float32)),
        grid_spec=pltpu.PrefetchScalarGridSpec(
            num_scalar_prefetch=0,
            grid=(n_pad // tn,),
            in_specs=[
                pl.BlockSpec((tn, in_feats), lambda i: (i, 0)),
                pl.BlockSpec((tn, 1), lambda i: (i, 0)),
                pl.BlockSpec((in_feats, N_CHUNKS * op), lambda i: (0, 0)),
                pl.BlockSpec((1, N_CHUNKS * op), lambda i: (0, 0)),
                pl.BlockSpec((in_feats, op), lambda i: (0, 0)),
                pl.BlockSpec((1, op), lambda i: (0, 0)),
            ],
            out_specs=[
                pl.BlockSpec((tn, slab_w), lambda i: (i, 0)),
                pl.BlockSpec((tn, op), lambda i: (i, 0)),
            ]),
        compiler_params=pltpu.CompilerParams(dimension_semantics=("parallel",)),
    )(h_p, norm_p, w_msg, b_msg, w_self, b_self)

    # ---------------- pass 1: per-edge messages (edge x src-node grid) ---------------
    msg = pl.pallas_call(
        edge_message_kernel,
        out_shape=jax.ShapeDtypeStruct((e_pad, op), jnp.bfloat16),
        grid_spec=pltpu.PrefetchScalarGridSpec(
            num_scalar_prefetch=0,
            grid=(e_pad // te, n_pad // tn),
            in_specs=[
                pl.BlockSpec((te, tn), lambda e, s: (e, s)),       # S src one-hot tile
                pl.BlockSpec((tn, slab_w), lambda e, s: (s, 0)),   # gather slab tile
                pl.BlockSpec((te, 6), lambda e, s: (e, 0)),        # degrees tile
                pl.BlockSpec((6, op), lambda e, s: (0, 0)),        # edge weights
            ],
            out_specs=pl.BlockSpec((te, op), lambda e, s: (e, 0)),
            scratch_shapes=[pltpu.VMEM((te, slab_w), jnp.float32)]),
        compiler_params=pltpu.CompilerParams(
            dimension_semantics=("parallel", "arbitrary")),
    )(s_mat, gather_slab, deg_p, w_edge)

    # ---------------- pass 2: scatter-add + node_apply (node x edge grid) ------------
    out_padded = pl.pallas_call(
        scatter_apply_kernel,
        out_shape=jax.ShapeDtypeStruct((n_pad, op), jnp.float32),
        grid_spec=pltpu.PrefetchScalarGridSpec(
            num_scalar_prefetch=0,
            grid=(n_pad // tn, e_pad // te),
            in_specs=[
                pl.BlockSpec((te, tn), lambda i, k: (k, i)),       # D dst one-hot tile
                pl.BlockSpec((te, op), lambda i, k: (k, 0)),       # msg tile
                pl.BlockSpec((tn, op), lambda i, k: (i, 0)),       # self slab tile
                pl.BlockSpec((tn, 1), lambda i, k: (i, 0)),        # dst norm
                pl.BlockSpec((1, op), lambda i, k: (0, 0)),        # node-apply bias
            ],
            out_specs=pl.BlockSpec((tn, op), lambda i, k: (i, 0)),
            scratch_shapes=[pltpu.VMEM((tn, op), jnp.float32)]),
        compiler_params=pltpu.CompilerParams(
            dimension_semantics=("parallel", "arbitrary")),
    )(d_mat, msg, self_slab, norm_p, bias)

    return out_padded[:N, :out_feats]


def gcn_layer_reference(h, degrees, norm, src, dst, params):
    """Pure-JAX reference (same semantics as the PyTorch module)."""
    hp = lambda a, b: jnp.dot(a, b, precision=jax.lax.Precision.HIGHEST)
    out_feats = params["w_self"].shape[1]
    h_node_msg = hp(h, params["w_node"]) + params["b_node"]
    h_node_self = hp(h, params["w_self"]) + params["b_self"]
    h_degrees = hp(degrees, params["w_edge"])
    src_msg = h_node_msg[src]
    msg = h_degrees
    for i in range(N_CHUNKS):
        gate = (degrees[:, i:i + 1] > 0).astype(jnp.float32)
        msg = msg + src_msg[:, i * out_feats:(i + 1) * out_feats] * gate
    msg = msg * norm[src]
    accum = jnp.zeros((h.shape[0], out_feats), jnp.float32).at[dst].add(msg) * norm
    return jnp.maximum(accum + h_node_self + params["bias"], 0.0)


def init_params(key, in_feats, out_feats):
    ks = jax.random.split(key, 6)
    stdev = 1.0 / jnp.sqrt(jnp.float32(out_feats))
    return {
        # nn.Linear(in_feats, out_feats*6)
        "w_node": jax.random.normal(ks[0], (in_feats, out_feats * 6), jnp.float32) * 0.1,
        "b_node": jax.random.normal(ks[1], (1, out_feats * 6), jnp.float32) * 0.1,
        # nn.Linear(in_feats, out_feats)
        "w_self": jax.random.normal(ks[2], (in_feats, out_feats), jnp.float32) * 0.1,
        "b_self": jax.random.normal(ks[3], (1, out_feats), jnp.float32) * 0.1,
        # nn.Linear(6, out_feats, bias=False)
        "w_edge": jax.random.normal(ks[4], (6, out_feats), jnp.float32) * 0.1,
        # self.bias = randn(1, out_feats) * 2*stdev - stdev
        "bias": jax.random.normal(ks[5], (1, out_feats), jnp.float32) * 2.0 * stdev - stdev,
    }


if __name__ == "__main__":
    key = jax.random.PRNGKey(0)
    k_graph, k_feat, k_param = jax.random.split(key, 3)

    N = 16          # nodes
    E = 32          # edges
    in_feats = 8
    out_feats = 32

    kg = jax.random.split(k_graph, 4)
    src = jax.random.randint(kg[0], (E,), 0, N, dtype=jnp.int32)
    dst = jax.random.randint(kg[1], (E,), 0, N, dtype=jnp.int32)
    # per-edge "degrees" feature [E, 6]; mix of zeros and positives so the gate matters
    degrees = jax.random.randint(kg[2], (E, 6), 0, 3).astype(jnp.float32)
    # per-node normalization [N, 1], strictly positive
    norm = jax.random.uniform(kg[3], (N, 1), jnp.float32, 0.1, 1.0)

    h = jax.random.normal(k_feat, (N, in_feats), jnp.float32)
    params = init_params(k_param, in_feats, out_feats)

    out = gcn_layer_forward(h, degrees, norm, src, dst, params)
    jax.block_until_ready(out)
    assert out.shape == (N, out_feats)

    ref = gcn_layer_reference(h, degrees, norm, src, dst, params)
    # Tolerance slightly widened vs. a pure-f32 path: the bf16 MXU operands (gather
    # slab, norm chunk, msg) each contribute ~0.2% relative rounding, per perf review.
    assert jnp.allclose(out, ref, atol=2e-2, rtol=2e-2), float(jnp.max(jnp.abs(out - ref)))
    print("KERNEL_OK")
</pallas_src>

<mosaic_0001>
module attributes {stable_mosaic.version = 11 : i64} {
  func.func @node_linear_kernel(%arg0: i32, %arg1: memref<128x8xf32, #tpu.memory_space<vmem>>, %arg2: memref<128x1xf32, #tpu.memory_space<vmem>>, %arg3: memref<8x768xf32, #tpu.memory_space<vmem>>, %arg4: memref<1x768xf32, #tpu.memory_space<vmem>>, %arg5: memref<8x128xf32, #tpu.memory_space<vmem>>, %arg6: memref<1x128xf32, #tpu.memory_space<vmem>>, %arg7: memref<128x896xbf16, #tpu.memory_space<vmem>>, %arg8: memref<128x128xf32, #tpu.memory_space<vmem>>) attributes {dimension_semantics = [#tpu.dimension_semantics<parallel>], iteration_bounds = array<i64: 1>, scalar_prefetch = 0 : i64, scratch_operands = 0 : i64, tpu.core_type = #tpu.core_type<tc>, window_params = [{transform_indices = @transform_0, window_bounds = array<i64: 128, 8>}, {transform_indices = @transform_1, window_bounds = array<i64: 128, 1>}, {pipeline_mode = #tpu.pipeline_mode<synchronous>, transform_indices = @transform_2, window_bounds = array<i64: 8, 768>}, {pipeline_mode = #tpu.pipeline_mode<synchronous>, transform_indices = @transform_3, window_bounds = array<i64: 1, 768>}, {pipeline_mode = #tpu.pipeline_mode<synchronous>, transform_indices = @transform_4, window_bounds = array<i64: 8, 128>}, {pipeline_mode = #tpu.pipeline_mode<synchronous>, transform_indices = @transform_5, window_bounds = array<i64: 1, 128>}, {transform_indices = @transform_6, window_bounds = array<i64: 128, 896>}, {transform_indices = @transform_7, window_bounds = array<i64: 128, 128>}]} {
    %c0 = arith.constant 0 : index
    %c0_0 = arith.constant 0 : index
    %0 = vector.load %arg1[%c0, %c0_0] : memref<128x8xf32, #tpu.memory_space<vmem>>, vector<128x8xf32>
    %c0_1 = arith.constant 0 : index
    %c0_2 = arith.constant 0 : index
    %1 = vector.load %arg3[%c0_1, %c0_2] : memref<8x768xf32, #tpu.memory_space<vmem>>, vector<8x768xf32>
    %cst = arith.constant dense<0.000000e+00> : vector<128x768xf32>
    %2 = tpu.matmul %0, %1, %cst {dimension_numbers = #tpu.dot_dimension_numbers<[1], [0], [0], [1], [0, 0, 1, 1], [], []>} : vector<128x8xf32>, vector<8x768xf32>, vector<128x768xf32> -> vector<128x768xf32>
    %c0_3 = arith.constant 0 : index
    %c0_4 = arith.constant 0 : index
    %3 = vector.load %arg4[%c0_3, %c0_4] : memref<1x768xf32, #tpu.memory_space<vmem>>, vector<1x768xf32>
    %4 = vector.broadcast %3 : vector<1x768xf32> to vector<128x768xf32>
    %5 = arith.addf %2, %4 : vector<128x768xf32>
    %6 = arith.truncf %5 : vector<128x768xf32> to vector<128x768xbf16>
    %c0_5 = arith.constant 0 : index
    %c0_6 = arith.constant 0 : index
    %7 = vector.load %arg7[%c0_5, %c0_6] : memref<128x896xbf16, #tpu.memory_space<vmem>>, vector<128x768xbf16>
    tpu.vector_store %arg7[%c0_5, %c0_6], %6 {strides = array<i32>} : memref<128x896xbf16, #tpu.memory_space<vmem>>, vector<128x768xbf16>,
    %c0_7 = arith.constant 0 : index
    %c0_8 = arith.constant 0 : index
    %8 = vector.load %arg2[%c0_7, %c0_8] : memref<128x1xf32, #tpu.memory_space<vmem>>, vector<128x1xf32>
    %9 = vector.shape_cast %8 : vector<128x1xf32> to vector<128x1xf32>
    %10 = vector.broadcast %9 : vector<128x1xf32> to vector<128x128xf32>
    %11 = arith.truncf %10 : vector<128x128xf32> to vector<128x128xbf16>
    %c0_9 = arith.constant 0 : index
    %c768 = arith.constant 768 : index
    %12 = vector.load %arg7[%c0_9, %c768] : memref<128x896xbf16, #tpu.memory_space<vmem>>, vector<128x128xbf16>
    tpu.vector_store %arg7[%c0_9, %c768], %11 {strides = array<i32>} : memref<128x896xbf16, #tpu.memory_space<vmem>>, vector<128x128xbf16>,
    %c0_10 = arith.constant 0 : index
    %c0_11 = arith.constant 0 : index
    %13 = vector.load %arg1[%c0_10, %c0_11] : memref<128x8xf32, #tpu.memory_space<vmem>>, vector<128x8xf32>
    %c0_12 = arith.constant 0 : index
    %c0_13 = arith.constant 0 : index
    %14 = vector.load %arg5[%c0_12, %c0_13] : memref<8x128xf32, #tpu.memory_space<vmem>>, vector<8x128xf32>
    %cst_14 = arith.constant dense<0.000000e+00> : vector<128x128xf32>
    %15 = tpu.matmul %13, %14, %cst_14 {dimension_numbers = #tpu.dot_dimension_numbers<[1], [0], [0], [1], [0, 0, 1, 1], [], []>} : vector<128x8xf32>, vector<8x128xf32>, vector<128x128xf32> -> vector<128x128xf32>
    %c0_15 = arith.constant 0 : index
    %c0_16 = arith.constant 0 : index
    %16 = vector.load %arg6[%c0_15, %c0_16] : memref<1x128xf32, #tpu.memory_space<vmem>>, vector<1x128xf32>
    %17 = vector.broadcast %16 : vector<1x128xf32> to vector<128x128xf32>
    %18 = arith.addf %15, %17 : vector<128x128xf32>
    %c0_17 = arith.constant 0 : index
    %c0_18 = arith.constant 0 : index
    %19 = vector.load %arg8[%c0_17, %c0_18] : memref<128x128xf32, #tpu.memory_space<vmem>>, vector<128x128xf32>
    tpu.vector_store %arg8[%c0_17, %c0_18], %18 {strides = array<i32>} : memref<128x128xf32, #tpu.memory_space<vmem>>, vector<128x128xf32>,
    return
  }
  func.func @transform_0(%arg0: i32) -> (i32, i32) {
    %c0_i32 = arith.constant 0 : i32
    %c0_i32_0 = arith.constant 0 : i32
    return %arg0, %c0_i32 : i32, i32
  }
  func.func @transform_1(%arg0: i32) -> (i32, i32) {
    %c0_i32 = arith.constant 0 : i32
    %c0_i32_0 = arith.constant 0 : i32
    return %arg0, %c0_i32 : i32, i32
  }
  func.func @transform_2(%arg0: i32) -> (i32, i32) {
    %c0_i32 = arith.constant 0 : i32
    %c0_i32_0 = arith.constant 0 : i32
    %c0_i32_1 = arith.constant 0 : i32
    return %c0_i32, %c0_i32_0 : i32, i32
  }
  func.func @transform_3(%arg0: i32) -> (i32, i32) {
    %c0_i32 = arith.constant 0 : i32
    %c0_i32_0 = arith.constant 0 : i32
    %c0_i32_1 = arith.constant 0 : i32
    return %c0_i32, %c0_i32_0 : i32, i32
  }
  func.func @transform_4(%arg0: i32) -> (i32, i32) {
    %c0_i32 = arith.constant 0 : i32
    %c0_i32_0 = arith.constant 0 : i32
    %c0_i32_1 = arith.constant 0 : i32
    return %c0_i32, %c0_i32_0 : i32, i32
  }
  func.func @transform_5(%arg0: i32) -> (i32, i32) {
    %c0_i32 = arith.constant 0 : i32
    %c0_i32_0 = arith.constant 0 : i32
    %c0_i32_1 = arith.constant 0 : i32
    return %c0_i32, %c0_i32_0 : i32, i32
  }
  func.func @transform_6(%arg0: i32) -> (i32, i32) {
    %c0_i32 = arith.constant 0 : i32
    %c0_i32_0 = arith.constant 0 : i32
    return %arg0, %c0_i32 : i32, i32
  }
  func.func @transform_7(%arg0: i32) -> (i32, i32) {
    %c0_i32 = arith.constant 0 : i32
    %c0_i32_0 = arith.constant 0 : i32
    return %arg0, %c0_i32 : i32, i32
  }
}

</mosaic_0001>

<bundles_post_ra>
// kernel: tpu_custom_call.1
= control target key start
LH: loop header
LB: loop body
LE: loop exit
PB: predicated region body
PF: predicated region fallthrough
CT: control target
= control target key end

     0   :  { %13 = vsyncpa [#allocation3], 0  ;;  %vm63_vm0 = vcmask 64512   ;;  %s1756_s0 = inlined_call_operand.vmem [shape: f32[128,8], index: 0, kind: input, shape index: {}]   ;;  %s1757_s1 = inlined_call_operand.vmem [shape: f32[128,1], index: 1, kind: input, shape index: {}]   ;;  %s1758_s2 = inlined_call_operand.vmem [shape: f32[8,768], index: 2, kind: input, shape index: {}]   ;;  %s1759_s3 = inlined_call_operand.vmem [shape: f32[1,768], index: 3, kind: input, shape index: {}]   ;;  %s1760_s4 = inlined_call_operand.vmem [shape: f32[8,128], index: 4, kind: input, shape index: {}]   ;;  %s1761_s5 = inlined_call_operand.vmem [shape: f32[1,128], index: 5, kind: input, shape index: {}]   ;;  %s1762_s6 = inlined_call_operand.hbm [shape: bf16[128,896], index: 6, kind: output, shape index: {0}]   ;;  %s1763_s7 = inlined_call_operand.hbm [shape: f32[128,128], index: 7, kind: output, shape index: {1}]  }
   0x1   :  { %v43_v0 = vld [vmem:[%s1758_s2] sm:$0xff]  ;;  %v44_v2 = vld [vmem:[%s1758_s2 + $0x8] sm:$0xff]  ;;  %v45_v3 = vld [vmem:[%s1758_s2 + $0x10] sm:$0xff] }
   0x2   :  { %v1183_v1 = vld [vmem:[%s1756_s0 + $0x60] sm:$0xff]  ;;  %1024 = vmatpush.msra.mxu3 %v43_v0  ;;  %127 = vmatpush.msra.mxu0 %v43_v0  ;;  %v48_v7 = vld [vmem:[%s1758_s2 + $0x28] sm:$0xff] }
   0x3   :  { %v1194_v4 = vld [vmem:[%s1756_s0] sm:$0xff]  ;;  %924 = vmatmul.msk.f32.vlgmr.msra.gmra.mxu3 %vm63_vm0, %v1183_v1  ;;  %257 = vmatpush.msra.mxu2 %v45_v3 }
   0x4   :  { %v742_v5 = vld [vmem:[%s1760_s4] sm:$0xff]  ;;  %1025 = vmatpush.msrb.mxu3 %v44_v2  ;;  %944 = vmatmul.msk.f32.vlgmr.msra.gmra.mxu2 %vm63_vm0, %v1194_v4 }
   0x5   :  { %v47_v6 = vld [vmem:[%s1758_s2 + $0x20] sm:$0xff]  ;;  %810 = vmatpush.msrb.mxu2 %v742_v5  ;;  %192 = vmatpush.msra.mxu1 %v44_v2 }
   0x6   :  { %912 = vmatmul.msk.f32.vlgmr.msra.gmra.mxu0 %vm63_vm0, %v1194_v4  ;;  %928 = vmatmul.msk.f32.vlgmr.msra.gmra.mxu1 %vm63_vm0, %v1194_v4 }
   0x7   :  { %14 = vsyncpa [#allocation5], 0  ;;  %387 = vmatpush.msrb.mxu0 %v47_v6  ;;  %452 = vmatpush.msrb.mxu1 %v48_v7  ;;  %v1216_v8 = vld [vmem:[%s1756_s0 + $0x68] sm:$0xff]  ;;  %v1234_v10 = vld [vmem:[%s1756_s0 + $0x70] sm:$0xff]  ;;  %v1130_v0 = vmov 0   ;;  %s882_s30 = sshll.u32 %s1762_s6, 4  ;;  %s883_s30 = int_to_ptr.hbm [resolvable:$true] %s882_s30 }
   0x8   :  { %1026 = vmatpush.msra.mxu3 %v45_v3  ;;  %v1221_v9 = vld [vmem:[%s1756_s0 + $0x8] sm:$0xff]  ;;  %v1239_v11 = vld [vmem:[%s1756_s0 + $0x10] sm:$0xff]  ;;  %v1252_v12 = vld [vmem:[%s1756_s0 + $0x78] sm:$0xff]  ;;  %1045 = vset.pattern.permute.xlu1 %v1130_v0  ;;  %s1132_s8 = smov [#allocation4]   ;;  %s895_s11 = sshll.u32 %s1763_s7, 4  ;;  %s896_s11 = int_to_ptr.hbm [resolvable:$true] %s895_s11 }
   0x9   :  { %v1257_v13 = vld [vmem:[%s1756_s0 + $0x18] sm:$0xff]  ;;  %v1270_v14 = vld [vmem:[%s1756_s0 + $0x20] sm:$0xff]  ;;  %v1286_v16 = vld [vmem:[%s1756_s0 + $0x28] sm:$0xff]  ;;  %1034 = vset.pattern.permute.xlu0 %v1130_v0  ;;  %1056 = vset.pattern.permute.xlu2 %v1130_v0  ;;  %s893_s9 = sshll.u32 %s1132_s8, 4  ;;  %s1133_s6 = smov 128   ;;  %s894_s9 = int_to_ptr.vmem [resolvable:$true] %s893_s9 }
   0xa   :  { %v46_v15 = vld [vmem:[%s1758_s2 + $0x18] sm:$0xff]  ;;  %v1299_v17 = vld [vmem:[%s1756_s0 + $0x30] sm:$0xff]  ;;  %v1325_v19 = vld [vmem:[%s1756_s0 + $0x40] sm:$0xff]  ;;  %s1134_s7 = smov 8   ;;  %s1135_s12 = smov 448  }
   0xb   :  { %925 = vmatmul.msk.f32.gmra.mxu3 %vm63_vm0, %v1216_v8  ;;  %v1312_v18 = vld [vmem:[%s1756_s0 + $0x38] sm:$0xff]  ;;  %v1338_v20 = vld [vmem:[%s1756_s0 + $0x48] sm:$0xff]  ;;  %v1351_v21 = vld [vmem:[%s1756_s0 + $0x50] sm:$0xff]  ;;  %s1136_s13 = smov 28  }
   0xc   :  { %945 = vmatmul.msk.f32.gmra.mxu2 %vm63_vm0, %v1221_v9  ;;  %v1364_v22 = vld [vmem:[%s1756_s0 + $0x58] sm:$0xff]  ;;  %v1405_v23 = vld [vmem:[%s1759_s3] sm:$0x3f]  ;;  %v603_v3 = vld [vmem:[%s1757_s1 + $0x28] sm:$0xff] }
   0xd   :  { %v1412_v24 = vperm.slane %v1405_v23, 0  ;;  %v1415_v25 = vperm.slane %v1405_v23, 1  ;;  %v602_v2 = vld [vmem:[%s1757_s1 + $0x20] sm:$0xff]  ;;  %v599_v6 = vld [vmem:[%s1757_s1 + $0x8] sm:$0xff] }
   0xe   :  { %913 = vmatmul.msk.f32.gmra.mxu0 %vm63_vm0, %v1221_v9  ;;  %929 = vmatmul.msk.f32.gmra.mxu1 %vm63_vm0, %v1221_v9  ;;  %v1046_v5 = vpack.i.bf16 %v603_v3, %v602_v2 }
  0x10   :  { %1047 = vperm.xlu1 %1045, %v1046_v5  }
  0x13   :  { %926 = vmatmul.msk.f32.gmra.mxu3 %vm63_vm0, %v1234_v10 }
  0x14   :  { %946 = vmatmul.msk.f32.gmra.mxu2 %vm63_vm0, %v1239_v11 }
  0x16   :  { %914 = vmatmul.msk.f32.gmra.mxu0 %vm63_vm0, %v1239_v11  ;;  %930 = vmatmul.msk.f32.gmra.mxu1 %vm63_vm0, %v1239_v11 }
  0x1b   :  { %927 = vmatmul.msk.f32.gmra.mxu3 %vm63_vm0, %v1252_v12 }
  0x1c   :  { %947 = vmatmul.msk.f32.gmra.mxu2 %vm63_vm0, %v1257_v13 }
  0x1e   :  { %915 = vmatmul.msk.f32.gmra.mxu0 %vm63_vm0, %v1257_v13  ;;  %931 = vmatmul.msk.f32.gmra.mxu1 %vm63_vm0, %v1257_v13 }
  0x23   :  { %940 = vmatmul.msk.f32.vlgmr.msrb.gmra.mxu3 %vm63_vm0, %v1183_v1 }
  0x24   :  { %948 = vmatmul.msk.f32.gmra.mxu2 %vm63_vm0, %v1270_v14  ;;  %322 = vmatpush.msrb.mxu3 %v46_v15 }
  0x26   :  { %916 = vmatmul.msk.f32.gmra.mxu0 %vm63_vm0, %v1270_v14  ;;  %932 = vmatmul.msk.f32.gmra.mxu1 %vm63_vm0, %v1270_v14 }
  0x2b   :  { %941 = vmatmul.msk.f32.gmra.mxu3 %vm63_vm0, %v1216_v8 }
  0x2c   :  { %949 = vmatmul.msk.f32.gmra.mxu2 %vm63_vm0, %v1286_v16 }
  0x2e   :  { %917 = vmatmul.msk.f32.gmra.mxu0 %vm63_vm0, %v1286_v16  ;;  %933 = vmatmul.msk.f32.gmra.mxu1 %vm63_vm0, %v1286_v16 }
  0x33   :  { %942 = vmatmul.msk.f32.gmra.mxu3 %vm63_vm0, %v1234_v10 }
  0x34   :  { %950 = vmatmul.msk.f32.gmra.mxu2 %vm63_vm0, %v1299_v17 }
  0x36   :  { %918 = vmatmul.msk.f32.gmra.mxu0 %vm63_vm0, %v1299_v17  ;;  %934 = vmatmul.msk.f32.gmra.mxu1 %vm63_vm0, %v1299_v17 }
  0x3b   :  { %943 = vmatmul.msk.f32.gmra.mxu3 %vm63_vm0, %v1252_v12 }
  0x3c   :  { %951 = vmatmul.msk.f32.gmra.mxu2 %vm63_vm0, %v1312_v18 }
  0x3e   :  { %919 = vmatmul.msk.f32.gmra.mxu0 %vm63_vm0, %v1312_v18  ;;  %935 = vmatmul.msk.f32.gmra.mxu1 %vm63_vm0, %v1312_v18 }
  0x43   :  { %956 = vmatmul.msk.f32.vlgmr.msra.gmra.mxu3 %vm63_vm0, %v1183_v1 }
  0x44   :  { %952 = vmatmul.msk.f32.gmra.mxu2 %vm63_vm0, %v1325_v19 }
  0x46   :  { %920 = vmatmul.msk.f32.gmra.mxu0 %vm63_vm0, %v1325_v19  ;;  %936 = vmatmul.msk.f32.gmra.mxu1 %vm63_vm0, %v1325_v19 }
  0x4b   :  { %957 = vmatmul.msk.f32.gmra.mxu3 %vm63_vm0, %v1216_v8 }
  0x4c   :  { %953 = vmatmul.msk.f32.gmra.mxu2 %vm63_vm0, %v1338_v20 }
  0x4e   :  { %921 = vmatmul.msk.f32.gmra.mxu0 %vm63_vm0, %v1338_v20  ;;  %937 = vmatmul.msk.f32.gmra.mxu1 %vm63_vm0, %v1338_v20 }
  0x53   :  { %958 = vmatmul.msk.f32.gmra.mxu3 %vm63_vm0, %v1234_v10 }
  0x54   :  { %954 = vmatmul.msk.f32.gmra.mxu2 %vm63_vm0, %v1351_v21 }
  0x56   :  { %922 = vmatmul.msk.f32.gmra.mxu0 %vm63_vm0, %v1351_v21  ;;  %938 = vmatmul.msk.f32.gmra.mxu1 %vm63_vm0, %v1351_v21 }
  0x5b   :  { %959 = vmatmul.msk.f32.gmra.mxu3 %vm63_vm0, %v1252_v12 }
  0x5c   :  { %955 = vmatmul.msk.f32.gmra.mxu2 %vm63_vm0, %v1364_v22 }
  0x5e   :  { %923 = vmatmul.msk.f32.gmra.mxu0 %vm63_vm0, %v1364_v22  ;;  %939 = vmatmul.msk.f32.gmra.mxu1 %vm63_vm0, %v1364_v22 }
  0x63   :  { %960 = vmatmul.msk.f32.vlgmr.msrb.gmra.mxu3 %vm63_vm0, %v1194_v4 }
  0x64   :  { %1008 = vmatmul.msk.f32.vlgmr.msrb.gmra.mxu2 %vm63_vm0, %v1194_v4 }
  0x66   :  { %976 = vmatmul.msk.f32.vlgmr.msrb.gmra.mxu0 %vm63_vm0, %v1194_v4  ;;  %992 = vmatmul.msk.f32.vlgmr.msrb.gmra.mxu1 %vm63_vm0, %v1194_v4  ;;  %v598_v4 = vld [vmem:[%s1757_s1] sm:$0xff] }
  0x6b   :  { %961 = vmatmul.msk.f32.gmra.mxu3 %vm63_vm0, %v1221_v9 }
  0x6c   :  { %1009 = vmatmul.msk.f32.gmra.mxu2 %vm63_vm0, %v1221_v9 }
  0x6e   :  { %977 = vmatmul.msk.f32.gmra.mxu0 %vm63_vm0, %v1221_v9  ;;  %993 = vmatmul.msk.f32.gmra.mxu1 %vm63_vm0, %v1221_v9 }
  0x73   :  { %962 = vmatmul.msk.f32.gmra.mxu3 %vm63_vm0, %v1239_v11 }
  0x74   :  { %1010 = vmatmul.msk.f32.gmra.mxu2 %vm63_vm0, %v1239_v11 }
  0x76   :  { %978 = vmatmul.msk.f32.gmra.mxu0 %vm63_vm0, %v1239_v11  ;;  %994 = vmatmul.msk.f32.gmra.mxu1 %vm63_vm0, %v1239_v11  ;;  %v1035_v11 = vpack.i.bf16 %v599_v6, %v598_v4 }
  0x78   :  { %1036 = vperm.xlu0 %1034, %v1035_v11  }
  0x7b   :  { %963 = vmatmul.msk.f32.gmra.mxu3 %vm63_vm0, %v1257_v13 }
  0x7c   :  { %1011 = vmatmul.msk.f32.gmra.mxu2 %vm63_vm0, %v1257_v13 }
  0x7e   :  { %979 = vmatmul.msk.f32.gmra.mxu0 %vm63_vm0, %v1257_v13  ;;  %995 = vmatmul.msk.f32.gmra.mxu1 %vm63_vm0, %v1257_v13 }
  0x83   :  { %964 = vmatmul.msk.f32.gmra.mxu3 %vm63_vm0, %v1270_v14  ;;  %v129_v26 = vpop.f32.mrf.mxu0  ;;  %v194_v27 = vpop.f32.mrf.mxu1 }
  0x84   :  { %1012 = vmatmul.msk.f32.gmra.mxu2 %vm63_vm0, %v1270_v14  ;;  %v130_v28 = vadd.f32 %v129_v26, %v1412_v24  ;;  %v195_v29 = vadd.f32 %v194_v27, %v1415_v25  ;;  %v604_v27 = vld [vmem:[%s1757_s1 + $0x30] sm:$0xff] }
  0x86   :  { %v165_v30 = vpop.f32.mrf.mxu3  ;;  %v502_v31 = vpack.c.bf16 %v195_v29, %v130_v28  ;;  %980 = vmatmul.msk.f32.gmra.mxu0 %vm63_vm0, %v1270_v14  ;;  %996 = vmatmul.msk.f32.gmra.mxu1 %vm63_vm0, %v1270_v14  ;;  %v605_v28 = vld [vmem:[%s1757_s1 + $0x38] sm:$0xff] }
  0x87   :  { %v1427_v32 = vpop.f32.mrf.mxu2  ;;  %v166_v60 = vadd.f32 %v165_v30, %v1412_v24  ;;  %v1051_v29 = vpack.i.bf16 %v605_v28, %v604_v27  ;;  %v601_v30 = vld [vmem:[%s1757_s1 + $0x18] sm:$0xff] }
  0x88   :  { %550 = vst [vmem:[#allocation2] sm:$0xff] %v502_v31 }
  0x89   :  { %1052 = vperm.xlu1 %1045, %v1051_v29   ;;  %v608_v29 = vld [vmem:[%s1757_s1 + $0x50] sm:$0xff] }
  0x8b   :  { %965 = vmatmul.msk.f32.gmra.mxu3 %vm63_vm0, %v1286_v16  ;;  %v132_v33 = vpop.f32.mrf.mxu0  ;;  %v197_v34 = vpop.f32.mrf.mxu1 }
  0x8c   :  { %1013 = vmatmul.msk.f32.gmra.mxu2 %vm63_vm0, %v1286_v16  ;;  %v133_v35 = vadd.f32 %v132_v33, %v1412_v24  ;;  %v198_v36 = vadd.f32 %v197_v34, %v1415_v25 }
  0x8e   :  { %v1435_v37 = vpop.f32.mrf.mxu3  ;;  %v505_v38 = vpack.c.bf16 %v198_v36, %v133_v35  ;;  %981 = vmatmul.msk.f32.gmra.mxu0 %vm63_vm0, %v1286_v16  ;;  %997 = vmatmul.msk.f32.gmra.mxu1 %vm63_vm0, %v1286_v16 }
  0x8f   :  { %v1441_v39 = vpop.f32.mrf.mxu2 }
  0x90   :  { %553 = vst [vmem:[#allocation2 + $0x1c] sm:$0xff] %v505_v38 }
  0x93   :  { %966 = vmatmul.msk.f32.gmra.mxu3 %vm63_vm0, %v1299_v17  ;;  %v135_v40 = vpop.f32.mrf.mxu0  ;;  %v200_v41 = vpop.f32.mrf.mxu1 }
  0x94   :  { %1014 = vmatmul.msk.f32.gmra.mxu2 %vm63_vm0, %v1299_v17  ;;  %v136_v42 = vadd.f32 %v135_v40, %v1412_v24  ;;  %v201_v43 = vadd.f32 %v200_v41, %v1415_v25 }
  0x96   :  { %v1449_v44 = vpop.f32.mrf.mxu3  ;;  %v508_v45 = vpack.c.bf16 %v201_v43, %v136_v42  ;;  %982 = vmatmul.msk.f32.gmra.mxu0 %vm63_vm0, %v1299_v17  ;;  %998 = vmatmul.msk.f32.gmra.mxu1 %vm63_vm0, %v1299_v17  ;;  %v169_v17 = vadd.f32 %v1435_v37, %v1412_v24 }
  0x97   :  { %v1455_v46 = vpop.f32.mrf.mxu2  ;;  %v172_v40 = vadd.f32 %v1449_v44, %v1412_v24  ;;  %v611_v44 = vld [vmem:[%s1757_s1 + $0x68] sm:$0xff] }
  0x98   :  { %556 = vst [vmem:[#allocation2 + $0x38] sm:$0xff] %v508_v45  ;;  %v612_v45 = vld [vmem:[%s1757_s1 + $0x70] sm:$0xff] }
  0x9b   :  { %967 = vmatmul.msk.f32.gmra.mxu3 %vm63_vm0, %v1312_v18  ;;  %v138_v47 = vpop.f32.mrf.mxu0  ;;  %v203_v48 = vpop.f32.mrf.mxu1 }
  0x9c   :  { %1015 = vmatmul.msk.f32.gmra.mxu2 %vm63_vm0, %v1312_v18  ;;  %v139_v49 = vadd.f32 %v138_v47, %v1412_v24  ;;  %v204_v50 = vadd.f32 %v203_v48, %v1415_v25  ;;  %v613_v47 = vld [vmem:[%s1757_s1 + $0x78] sm:$0xff] }
  0x9d   :  { %v1072_v48 = vpack.i.bf16 %v613_v47, %v612_v45 }
  0x9e   :  { %v1463_v51 = vpop.f32.mrf.mxu3  ;;  %v511_v52 = vpack.c.bf16 %v204_v50, %v139_v49  ;;  %983 = vmatmul.msk.f32.gmra.mxu0 %vm63_vm0, %v1312_v18  ;;  %999 = vmatmul.msk.f32.gmra.mxu1 %vm63_vm0, %v1312_v18 }
  0x9f   :  { %v1469_v53 = vpop.f32.mrf.mxu2  ;;  %1073 = vperm.xlu1 %1045, %v1072_v48  }
  0xa0   :  { %559 = vst [vmem:[#allocation2 + $0x54] sm:$0xff] %v511_v52 }
  0xa3   :  { %968 = vmatmul.msk.f32.gmra.mxu3 %vm63_vm0, %v1325_v19  ;;  %v141_v54 = vpop.f32.mrf.mxu0  ;;  %v206_v55 = vpop.f32.mrf.mxu1 }
  0xa4   :  { %1016 = vmatmul.msk.f32.gmra.mxu2 %vm63_vm0, %v1325_v19  ;;  %v142_v56 = vadd.f32 %v141_v54, %v1412_v24  ;;  %v207_v57 = vadd.f32 %v206_v55, %v1415_v25 }
  0xa6   :  { %v514_v58 = vpack.c.bf16 %v207_v57, %v142_v56  ;;  %v230_v59 = vpop.f32.mrf.mxu3  ;;  %984 = vmatmul.msk.f32.gmra.mxu0 %vm63_vm0, %v1325_v19  ;;  %1000 = vmatmul.msk.f32.gmra.mxu1 %vm63_vm0, %v1325_v19 }
  0xa7   :  { %v231_v61 = vadd.f32 %v230_v59, %v1415_v25  ;;  %v1483_v62 = vpop.f32.mrf.mxu2 }
  0xa8   :  { %562 = vst [vmem:[#allocation2 + $0x70] sm:$0xff] %v514_v58  ;;  %v175_v58 = vadd.f32 %v1463_v51, %v1412_v24 }
  0xa9   :  { %v538_v63 = vpack.c.bf16 %v231_v61, %v166_v60 }
  0xab   :  { %586 = vst [vmem:[#allocation2 + $0x150] sm:$0xff] %v538_v63  ;;  %969 = vmatmul.msk.f32.gmra.mxu3 %vm63_vm0, %v1338_v20  ;;  %v144_v7 = vpop.f32.mrf.mxu0  ;;  %v209_v9 = vpop.f32.mrf.mxu1 }
  0xac   :  { %1017 = vmatmul.msk.f32.gmra.mxu2 %vm63_vm0, %v1338_v20  ;;  %v145_v13 = vadd.f32 %v144_v7, %v1412_v24  ;;  %v210_v14 = vadd.f32 %v209_v9, %v1415_v25 }
  0xae   :  { %v517_v15 = vpack.c.bf16 %v210_v14, %v145_v13  ;;  %v233_v16 = vpop.f32.mrf.mxu3  ;;  %985 = vmatmul.msk.f32.gmra.mxu0 %vm63_vm0, %v1338_v20  ;;  %1001 = vmatmul.msk.f32.gmra.mxu1 %vm63_vm0, %v1338_v20  ;;  %v600_v20 = vld [vmem:[%s1757_s1 + $0x10] sm:$0xff]  ;;  %v606_v14 = vld [vmem:[%s1757_s1 + $0x40] sm:$0xff] }
  0xaf   :  { %v234_v18 = vadd.f32 %v233_v16, %v1415_v25  ;;  %v1510_v19 = vpop.f32.mrf.mxu2  ;;  %v1040_v34 = vpack.i.bf16 %v601_v30, %v600_v20  ;;  %v609_v30 = vld [vmem:[%s1757_s1 + $0x58] sm:$0xff] }
  0xb0   :  { %565 = vst [vmem:[#allocation2 + $0x8c] sm:$0xff] %v517_v15  ;;  %v607_v15 = vld [vmem:[%s1757_s1 + $0x48] sm:$0xff] }
  0xb1   :  { %v541_v26 = vpack.c.bf16 %v234_v18, %v169_v17  ;;  %1041 = vperm.xlu0 %1034, %v1040_v34   ;;  %v1057_v16 = vpack.i.bf16 %v607_v15, %v606_v14 }
  0xb3   :  { %589 = vst [vmem:[#allocation2 + $0x16c] sm:$0xff] %v541_v26  ;;  %970 = vmatmul.msk.f32.gmra.mxu3 %vm63_vm0, %v1351_v21  ;;  %v147_v31 = vpop.f32.mrf.mxu0  ;;  %v212_v33 = vpop.f32.mrf.mxu1  ;;  %1058 = vperm.xlu2 %1056, %v1057_v16  }
  0xb4   :  { %1018 = vmatmul.msk.f32.gmra.mxu2 %vm63_vm0, %v1351_v21  ;;  %v148_v35 = vadd.f32 %v147_v31, %v1412_v24  ;;  %v213_v36 = vadd.f32 %v212_v33, %v1415_v25  ;;  %v1062_v31 = vpack.i.bf16 %v609_v30, %v608_v29 }
  0xb6   :  { %v520_v37 = vpack.c.bf16 %v213_v36, %v148_v35  ;;  %v236_v38 = vpop.f32.mrf.mxu3  ;;  %986 = vmatmul.msk.f32.gmra.mxu0 %vm63_vm0, %v1351_v21  ;;  %1002 = vmatmul.msk.f32.gmra.mxu1 %vm63_vm0, %v1351_v21  ;;  %v610_v21 = vld [vmem:[%s1757_s1 + $0x60] sm:$0xff] }
  0xb7   :  { %v237_v41 = vadd.f32 %v236_v38, %v1415_v25  ;;  %v1537_v42 = vpop.f32.mrf.mxu2  ;;  %v1067_v52 = vpack.i.bf16 %v611_v44, %v610_v21  ;;  %v1651_v21 = vld [vmem:[%s1761_s5] ss:$0 sm:$0xff]  ;;  %s1131_s5 = smov [#allocation2]  }
  0xb8   :  { %568 = vst [vmem:[#allocation2 + $0xa8] sm:$0xff] %v520_v37  ;;  %s1741_s27 = sshll.u32 %s1131_s5, 4  ;;  %s881_s27 = int_to_ptr.vmem [resolvable:$true] %s1741_s27 }
  0xb9   :  { %v544_v43 = vpack.c.bf16 %v237_v41, %v172_v40  ;;  %1068 = vperm.xlu0 %1034, %v1067_v52   ;;  %v1635_v40 = vperm.slane %v1405_v23, 4  ;;  %v1644_v41 = vperm.slane %v1405_v23, 3 }
  0xbb   :  { %592 = vst [vmem:[#allocation2 + $0x188] sm:$0xff] %v544_v43  ;;  %971 = vmatmul.msk.f32.gmra.mxu3 %vm63_vm0, %v1364_v22  ;;  %v150_v49 = vpop.f32.mrf.mxu0  ;;  %v215_v50 = vpop.f32.mrf.mxu1  ;;  %1063 = vperm.xlu2 %1056, %v1062_v31  }
  0xbc   :  { %1019 = vmatmul.msk.f32.gmra.mxu2 %vm63_vm0, %v1364_v22  ;;  %v151_v54 = vadd.f32 %v150_v49, %v1412_v24  ;;  %v216_v55 = vadd.f32 %v215_v50, %v1415_v25 }
  0xbe   :  { %v523_v56 = vpack.c.bf16 %v216_v55, %v151_v54  ;;  %v239_v57 = vpop.f32.mrf.mxu3  ;;  %987 = vmatmul.msk.f32.gmra.mxu0 %vm63_vm0, %v1364_v22  ;;  %1003 = vmatmul.msk.f32.gmra.mxu1 %vm63_vm0, %v1364_v22 }
  0xbf   :  { %v240_v59 = vadd.f32 %v239_v57, %v1415_v25  ;;  %v1564_v60 = vpop.f32.mrf.mxu2 }
  0xc0   :  { %571 = vst [vmem:[#allocation2 + $0xc4] sm:$0xff] %v523_v56 }
  0xc1   :  { %v547_v61 = vpack.c.bf16 %v240_v59, %v175_v58 }
  0xc3   :  { %595 = vst [vmem:[#allocation2 + $0x1a4] sm:$0xff] %v547_v61  ;;  %972 = vmatmul.msk.f32.gmra.mxu3 %vm63_vm0, %v1183_v1  ;;  %v153_v63 = vpop.f32.mrf.mxu0  ;;  %v218_v0 = vpop.f32.mrf.mxu1 }
  0xc4   :  { %1020 = vmatmul.msk.f32.gmra.mxu2 %vm63_vm0, %v1183_v1  ;;  %v154_v22 = vadd.f32 %v153_v63, %v1412_v24  ;;  %v219_v2 = vadd.f32 %v218_v0, %v1415_v25 }
  0xc6   :  { %v526_v51 = vpack.c.bf16 %v219_v2, %v154_v22  ;;  %v1572_v3 = vpop.f32.mrf.mxu3  ;;  %988 = vmatmul.msk.f32.gmra.mxu0 %vm63_vm0, %v1183_v1  ;;  %1004 = vmatmul.msk.f32.gmra.mxu1 %vm63_vm0, %v1183_v1 }
  0xc7   :  { %v1578_v4 = vpop.f32.mrf.mxu2 }
  0xc8   :  { %574 = vst [vmem:[#allocation2 + $0xe0] sm:$0xff] %v526_v51 }
  0xcb   :  { %973 = vmatmul.msk.f32.gmra.mxu3 %vm63_vm0, %v1216_v8  ;;  %v156_v5 = vpop.f32.mrf.mxu0  ;;  %v221_v6 = vpop.f32.mrf.mxu1 }
  0xcc   :  { %1021 = vmatmul.msk.f32.gmra.mxu2 %vm63_vm0, %v1216_v8  ;;  %v157_v7 = vadd.f32 %v156_v5, %v1412_v24  ;;  %v222_v9 = vadd.f32 %v221_v6, %v1415_v25 }
  0xce   :  { %v529_v11 = vpack.c.bf16 %v222_v9, %v157_v7  ;;  %v1586_v13 = vpop.f32.mrf.mxu3  ;;  %989 = vmatmul.msk.f32.gmra.mxu0 %vm63_vm0, %v1216_v8  ;;  %1005 = vmatmul.msk.f32.gmra.mxu1 %vm63_vm0, %v1216_v8 }
  0xcf   :  { %v1592_v1 = vpop.f32.mrf.mxu2 }
  0xd0   :  { %577 = vst [vmem:[#allocation2 + $0xfc] sm:$0xff] %v529_v11 }
  0xd3   :  { %974 = vmatmul.msk.f32.gmra.mxu3 %vm63_vm0, %v1234_v10  ;;  %v159_v17 = vpop.f32.mrf.mxu0  ;;  %v224_v18 = vpop.f32.mrf.mxu1 }
  0xd4   :  { %1022 = vmatmul.msk.f32.gmra.mxu2 %vm63_vm0, %v1234_v10  ;;  %v160_v8 = vadd.f32 %v159_v17, %v1412_v24  ;;  %v225_v26 = vadd.f32 %v224_v18, %v1415_v25 }
  0xd6   :  { %v532_v27 = vpack.c.bf16 %v225_v26, %v160_v8  ;;  %v1606_v28 = vpop.f32.mrf.mxu3  ;;  %990 = vmatmul.msk.f32.gmra.mxu0 %vm63_vm0, %v1234_v10  ;;  %1006 = vmatmul.msk.f32.gmra.mxu1 %vm63_vm0, %v1234_v10 }
  0xd7   :  { %v1612_v20 = vpop.f32.mrf.mxu2 }
  0xd8   :  { %580 = vst [vmem:[#allocation2 + $0x118] sm:$0xff] %v532_v27 }
  0xdb   :  { %975 = vmatmul.msk.f32.gmra.mxu3 %vm63_vm0, %v1252_v12  ;;  %v162_v33 = vpop.f32.mrf.mxu0  ;;  %v227_v34 = vpop.f32.mrf.mxu1 }
  0xdc   :  { %1023 = vmatmul.msk.f32.gmra.mxu2 %vm63_vm0, %v1252_v12  ;;  %v163_v10 = vadd.f32 %v162_v33, %v1412_v24  ;;  %v228_v35 = vadd.f32 %v227_v34, %v1415_v25  ;;  %v1638_v24 = vperm.slane %v1405_v23, 5  ;;  %v1641_v25 = vperm.slane %v1405_v23, 2 }
  0xde   :  { %v535_v36 = vpack.c.bf16 %v228_v35, %v163_v10  ;;  %v1626_v37 = vpop.f32.mrf.mxu3  ;;  %991 = vmatmul.msk.f32.gmra.mxu0 %vm63_vm0, %v1252_v12  ;;  %1007 = vmatmul.msk.f32.gmra.mxu1 %vm63_vm0, %v1252_v12  ;;  %v260_v49 = vadd.f32 %v1427_v32, %v1641_v25  ;;  %v263_v32 = vadd.f32 %v1441_v39, %v1641_v25 }
  0xdf   :  { %v1632_v38 = vpop.f32.mrf.mxu2  ;;  %v266_v39 = vadd.f32 %v1455_v46, %v1641_v25  ;;  %v269_v46 = vadd.f32 %v1469_v53, %v1641_v25  ;;  %v272_v53 = vadd.f32 %v1483_v62, %v1641_v25  ;;  %v275_v62 = vadd.f32 %v1510_v19, %v1641_v25 }
  0xe0   :  { %583 = vst [vmem:[#allocation2 + $0x134] sm:$0xff] %v535_v36  ;;  %v278_v19 = vadd.f32 %v1537_v42, %v1641_v25  ;;  %v281_v42 = vadd.f32 %v1564_v60, %v1641_v25 }
  0xe3   :  { %v389_v43 = vpop.f32.mrf.mxu0  ;;  %v454_v45 = vpop.f32.mrf.mxu1 }
  0xe4   :  { %v390_v47 = vadd.f32 %v389_v43, %v1635_v40  ;;  %v455_v12 = vadd.f32 %v454_v45, %v1638_v24 }
  0xe6   :  { %v324_v48 = vpop.f32.mrf.mxu3  ;;  %v504_v44 = vpack.c.bf16 %v455_v12, %v390_v47 }
  0xe7   :  { %v325_v50 = vadd.f32 %v324_v48, %v1644_v41  ;;  %v812_v23 = vpop.f32.mrf.mxu2 }
  0xe8   :  { %552 = vst [vmem:[#allocation2 + $0x10] sm:$0xff] %v504_v44  ;;  %v813_v52 = vadd.f32 %v1651_v21, %v812_v23 }
  0xe9   :  { %v503_v54 = vpack.c.bf16 %v325_v50, %v260_v49 }
  0xea   :  { %860 = vst [vmem:[#allocation4] sm:$0xff] %v813_v52 }
  0xeb   :  { %551 = vst [vmem:[#allocation2 + $0x8] sm:$0xff] %v503_v54  ;;  %v392_v55 = vpop.f32.mrf.mxu0  ;;  %v457_v56 = vpop.f32.mrf.mxu1 }
  0xec   :  { %v393_v57 = vadd.f32 %v392_v55, %v1635_v40  ;;  %v458_v58 = vadd.f32 %v457_v56, %v1638_v24 }
  0xee   :  { %v327_v59 = vpop.f32.mrf.mxu3  ;;  %v507_v61 = vpack.c.bf16 %v458_v58, %v393_v57 }
  0xef   :  { %v328_v63 = vadd.f32 %v327_v59, %v1644_v41  ;;  %v815_v0 = vpop.f32.mrf.mxu2 }
  0xf0   :  { %555 = vst [vmem:[#allocation2 + $0x2c] sm:$0xff] %v507_v61  ;;  %v816_v22 = vadd.f32 %v1651_v21, %v815_v0 }
  0xf1   :  { %v506_v2 = vpack.c.bf16 %v328_v63, %v263_v32 }
  0xf2   :  { %861 = vst [vmem:[#allocation4 + $0x8] sm:$0xff] %v816_v22 }
  0xf3   :  { %554 = vst [vmem:[#allocation2 + $0x24] sm:$0xff] %v506_v2  ;;  %v395_v51 = vpop.f32.mrf.mxu0  ;;  %v460_v5 = vpop.f32.mrf.mxu1 }
  0xf4   :  { %v396_v6 = vadd.f32 %v395_v51, %v1635_v40  ;;  %v461_v7 = vadd.f32 %v460_v5, %v1638_v24 }
  0xf6   :  { %v330_v9 = vpop.f32.mrf.mxu3  ;;  %v510_v11 = vpack.c.bf16 %v461_v7, %v396_v6 }
  0xf7   :  { %v331_v14 = vadd.f32 %v330_v9, %v1644_v41  ;;  %v818_v15 = vpop.f32.mrf.mxu2 }
  0xf8   :  { %558 = vst [vmem:[#allocation2 + $0x48] sm:$0xff] %v510_v11  ;;  %v819_v16 = vadd.f32 %v1651_v21, %v818_v15 }
  0xf9   :  { %v509_v17 = vpack.c.bf16 %v331_v14, %v266_v39 }
  0xfa   :  { %862 = vst [vmem:[#allocation4 + $0x10] sm:$0xff] %v819_v16 }
  0xfb   :  { %557 = vst [vmem:[#allocation2 + $0x40] sm:$0xff] %v509_v17  ;;  %v398_v18 = vpop.f32.mrf.mxu0  ;;  %v463_v8 = vpop.f32.mrf.mxu1 }
  0xfc   :  { %v399_v26 = vadd.f32 %v398_v18, %v1635_v40  ;;  %v464_v27 = vadd.f32 %v463_v8, %v1638_v24  ;;  %v1048_v8 = vpop.permute.xlu1 %1047 }
  0xfe   :  { %v333_v29 = vpop.f32.mrf.mxu3  ;;  %v513_v30 = vpack.c.bf16 %v464_v27, %v399_v26 }
  0xff   :  { %v334_v31 = vadd.f32 %v333_v29, %v1644_v41  ;;  %v821_v33 = vpop.f32.mrf.mxu2  ;;  %v1050_v29 = vunpack.i.h.bf16 %v1048_v8 }
 0x100   :  { %561 = vst [vmem:[#allocation2 + $0x64] sm:$0xff] %v513_v30  ;;  %v822_v34 = vadd.f32 %v1651_v21, %v821_v33  ;;  %v1049_v30 = vunpack.i.l.bf16 %v1048_v8 }
 0x101   :  { %v512_v10 = vpack.c.bf16 %v334_v31, %v269_v46  ;;  %v1037_v46 = vpop.permute.xlu0 %1036 }
 0x102   :  { %863 = vst [vmem:[#allocation4 + $0x18] sm:$0xff] %v822_v34  ;;  %v1039_v33 = vunpack.i.h.bf16 %v1037_v46  ;;  %v1038_v34 = vunpack.i.l.bf16 %v1037_v46 }
 0x103   :  { %560 = vst [vmem:[#allocation2 + $0x5c] sm:$0xff] %v512_v10  ;;  %v401_v35 = vpop.f32.mrf.mxu0  ;;  %v466_v36 = vpop.f32.mrf.mxu1 }
 0x104   :  { %v402_v43 = vadd.f32 %v401_v35, %v1635_v40  ;;  %v467_v45 = vadd.f32 %v466_v36, %v1638_v24  ;;  %v699_v35 = vpack.c.bf16 %v1050_v29, %v1050_v29  ;;  %v698_v36 = vpack.c.bf16 %v1049_v30, %v1049_v30 }
 0x105   :  { %v694_v60 = vpack.c.bf16 %v1038_v34, %v1038_v34 }
 0x106   :  { %v336_v47 = vpop.f32.mrf.mxu3  ;;  %v516_v12 = vpack.c.bf16 %v467_v45, %v402_v43  ;;  %v695_v43 = vpack.c.bf16 %v1039_v33, %v1039_v33  ;;  %715 = vst [vmem:[#allocation2 + $0xa4] sm:$0xf] %v699_v35 }
 0x107   :  { %v337_v48 = vadd.f32 %v336_v47, %v1644_v41  ;;  %v824_v44 = vpop.f32.mrf.mxu2  ;;  %714 = vst [vmem:[#allocation2 + $0x88] sm:$0xf] %v698_v36 }
 0x108   :  { %564 = vst [vmem:[#allocation2 + $0x80] sm:$0xff] %v516_v12  ;;  %v825_v49 = vadd.f32 %v1651_v21, %v824_v44 }
 0x109   :  { %v515_v50 = vpack.c.bf16 %v337_v48, %v272_v53  ;;  %711 = vst [vmem:[#allocation2 + $0x34] sm:$0xf] %v695_v43 }
 0x10a   :  { %864 = vst [vmem:[#allocation4 + $0x20] sm:$0xff] %v825_v49  ;;  %v1053_v49 = vpop.permute.xlu1 %1052 }
 0x10b   :  { %563 = vst [vmem:[#allocation2 + $0x78] sm:$0xff] %v515_v50  ;;  %v404_v23 = vpop.f32.mrf.mxu0  ;;  %v469_v52 = vpop.f32.mrf.mxu1  ;;  %v284_v50 = vadd.f32 %v1578_v4, %v1641_v25 }
 0x10c   :  { %v405_v54 = vadd.f32 %v404_v23, %v1635_v40  ;;  %v470_v55 = vadd.f32 %v469_v52, %v1638_v24  ;;  %710 = vst [vmem:[#allocation2 + $0x18] sm:$0xf] %v694_v60 }
 0x10e   :  { %v339_v56 = vpop.f32.mrf.mxu3  ;;  %v519_v57 = vpack.c.bf16 %v470_v55, %v405_v54  ;;  %v1055_v54 = vunpack.i.h.bf16 %v1053_v49  ;;  %v1054_v55 = vunpack.i.l.bf16 %v1053_v49 }
 0x10f   :  { %v340_v58 = vadd.f32 %v339_v56, %v1644_v41  ;;  %v827_v59 = vpop.f32.mrf.mxu2 }
 0x110   :  { %567 = vst [vmem:[#allocation2 + $0x9c] sm:$0xff] %v519_v57  ;;  %v828_v61 = vadd.f32 %v1651_v21, %v827_v59 }
 0x111   :  { %v518_v32 = vpack.c.bf16 %v340_v58, %v275_v62 }
 0x112   :  { %865 = vst [vmem:[#allocation4 + $0x28] sm:$0xff] %v828_v61  ;;  %v701_v61 = vpack.c.bf16 %v1055_v54, %v1055_v54 }
 0x113   :  { %566 = vst [vmem:[#allocation2 + $0x94] sm:$0xff] %v518_v32  ;;  %v407_v63 = vpop.f32.mrf.mxu0  ;;  %v472_v0 = vpop.f32.mrf.mxu1  ;;  %v700_v32 = vpack.c.bf16 %v1054_v55, %v1054_v55 }
 0x114   :  { %v408_v22 = vadd.f32 %v407_v63, %v1635_v40  ;;  %v473_v2 = vadd.f32 %v472_v0, %v1638_v24  ;;  %717 = vst [vmem:[#allocation2 + $0xdc] sm:$0xf] %v701_v61 }
 0x115   :  { %716 = vst [vmem:[#allocation2 + $0xc0] sm:$0xf] %v700_v32 }
 0x116   :  { %v342_v51 = vpop.f32.mrf.mxu3  ;;  %v522_v5 = vpack.c.bf16 %v473_v2, %v408_v22 }
 0x117   :  { %v343_v6 = vadd.f32 %v342_v51, %v1644_v41  ;;  %v830_v7 = vpop.f32.mrf.mxu2 }
 0x118   :  { %570 = vst [vmem:[#allocation2 + $0xb8] sm:$0xff] %v522_v5  ;;  %v831_v9 = vadd.f32 %v1651_v21, %v830_v7  ;;  %v287_v7 = vadd.f32 %v1592_v1, %v1641_v25 }
 0x119   :  { %v521_v11 = vpack.c.bf16 %v343_v6, %v278_v19  ;;  %v1059_v6 = vpop.permute.xlu2 %1058 }
 0x11a   :  { %866 = vst [vmem:[#allocation4 + $0x30] sm:$0xff] %v831_v9 }
 0x11b   :  { %569 = vst [vmem:[#allocation2 + $0xb0] sm:$0xff] %v521_v11  ;;  %v410_v39 = vpop.f32.mrf.mxu0  ;;  %v475_v14 = vpop.f32.mrf.mxu1 }
 0x11c   :  { %v411_v15 = vadd.f32 %v410_v39, %v1635_v40  ;;  %v476_v16 = vadd.f32 %v475_v14, %v1638_v24  ;;  %v1061_v39 = vunpack.i.h.bf16 %v1059_v6  ;;  %v1060_v14 = vunpack.i.l.bf16 %v1059_v6 }
 0x11e   :  { %v345_v17 = vpop.f32.mrf.mxu3  ;;  %v525_v18 = vpack.c.bf16 %v476_v16, %v411_v15  ;;  %v1074_v15 = vpop.permute.xlu1 %1073 }
 0x11f   :  { %v346_v26 = vadd.f32 %v345_v17, %v1644_v41  ;;  %v833_v27 = vpop.f32.mrf.mxu2  ;;  %v1076_v17 = vunpack.i.h.bf16 %v1074_v15 }
 0x120   :  { %573 = vst [vmem:[#allocation2 + $0xd4] sm:$0xff] %v525_v18  ;;  %v834_v31 = vadd.f32 %v1651_v21, %v833_v27  ;;  %v1075_v18 = vunpack.i.l.bf16 %v1074_v15  ;;  %v702_v27 = vpack.c.bf16 %v1060_v14, %v1060_v14 }
 0x121   :  { %v524_v10 = vpack.c.bf16 %v346_v26, %v281_v42  ;;  %v703_v26 = vpack.c.bf16 %v1061_v39, %v1061_v39  ;;  %v709_v30 = vpack.c.bf16 %v1076_v17, %v1076_v17 }
 0x122   :  { %867 = vst [vmem:[#allocation4 + $0x38] sm:$0xff] %v834_v31  ;;  %v708_v31 = vpack.c.bf16 %v1075_v18, %v1075_v18 }
 0x123   :  { %572 = vst [vmem:[#allocation2 + $0xcc] sm:$0xff] %v524_v10  ;;  %v413_v45 = vpop.f32.mrf.mxu0  ;;  %v478_v47 = vpop.f32.mrf.mxu1 }
 0x124   :  { %v414_v12 = vadd.f32 %v413_v45, %v1635_v40  ;;  %v479_v53 = vadd.f32 %v478_v47, %v1638_v24  ;;  %v1042_v56 = vpop.permute.xlu0 %1041  ;;  %719 = vst [vmem:[#allocation2 + $0x114] sm:$0xf] %v703_v26  ;;  %v1064_v45 = vpop.permute.xlu2 %1063  ;;  %v290_v47 = vadd.f32 %v1612_v20, %v1641_v25 }
 0x125   :  { %v1044_v62 = vunpack.i.h.bf16 %v1042_v56  ;;  %v1043_v58 = vunpack.i.l.bf16 %v1042_v56  ;;  %718 = vst [vmem:[#allocation2 + $0xf8] sm:$0xf] %v702_v27 }
 0x126   :  { %v348_v48 = vpop.f32.mrf.mxu3  ;;  %v528_v44 = vpack.c.bf16 %v479_v53, %v414_v12  ;;  %725 = vst [vmem:[#allocation2 + $0x1bc] sm:$0xf] %v709_v30  ;;  %v1066_v53 = vunpack.i.h.bf16 %v1064_v45 }
 0x127   :  { %v349_v23 = vadd.f32 %v348_v48, %v1644_v41  ;;  %v836_v52 = vpop.f32.mrf.mxu2  ;;  %v697_v63 = vpack.c.bf16 %v1044_v62, %v1044_v62  ;;  %v696_v22 = vpack.c.bf16 %v1043_v58, %v1043_v58  ;;  %724 = vst [vmem:[#allocation2 + $0x1a0] sm:$0xf] %v708_v31  ;;  %v1065_v48 = vunpack.i.l.bf16 %v1064_v45 }
 0x128   :  { %576 = vst [vmem:[#allocation2 + $0xf0] sm:$0xff] %v528_v44  ;;  %v837_v57 = vadd.f32 %v1651_v21, %v836_v52  ;;  %v293_v58 = vadd.f32 %v1632_v38, %v1641_v25  ;;  %v296_v38 = vadd.f32 %v1572_v3, %v1641_v25  ;;  %v299_v3 = vadd.f32 %v1586_v13, %v1641_v25 }
 0x129   :  { %v527_v59 = vpack.c.bf16 %v349_v23, %v284_v50  ;;  %713 = vst [vmem:[#allocation2 + $0x6c] sm:$0xf] %v697_v63  ;;  %v705_v23 = vpack.c.bf16 %v1066_v53, %v1066_v53  ;;  %v704_v52 = vpack.c.bf16 %v1065_v48, %v1065_v48  ;;  %v302_v13 = vadd.f32 %v1606_v28, %v1641_v25 }
 0x12a   :  { %868 = vst [vmem:[#allocation4 + $0x40] sm:$0xff] %v837_v57 }
 0x12b   :  { %575 = vst [vmem:[#allocation2 + $0xe8] sm:$0xff] %v527_v59  ;;  %v416_v0 = vpop.f32.mrf.mxu0  ;;  %v481_v4 = vpop.f32.mrf.mxu1 }
 0x12c   :  { %v417_v2 = vadd.f32 %v416_v0, %v1635_v40  ;;  %v482_v51 = vadd.f32 %v481_v4, %v1638_v24  ;;  %712 = vst [vmem:[#allocation2 + $0x50] sm:$0xf] %v696_v22  ;;  %v1069_v8 = vpop.permute.xlu0 %1068 }
 0x12d   :  { %v1071_v29 = vunpack.i.h.bf16 %v1069_v8  ;;  %v1070_v10 = vunpack.i.l.bf16 %v1069_v8  ;;  %721 = vst [vmem:[#allocation2 + $0x14c] sm:$0xf] %v705_v23 }
 0x12e   :  { %v351_v5 = vpop.f32.mrf.mxu3  ;;  %v531_v19 = vpack.c.bf16 %v482_v51, %v417_v2  ;;  %720 = vst [vmem:[#allocation2 + $0x130] sm:$0xf] %v704_v52 }
 0x12f   :  { %v352_v9 = vadd.f32 %v351_v5, %v1644_v41  ;;  %v839_v11 = vpop.f32.mrf.mxu2  ;;  %v707_v35 = vpack.c.bf16 %v1071_v29, %v1071_v29  ;;  %v706_v49 = vpack.c.bf16 %v1070_v10, %v1070_v10 }
 0x130   :  { %579 = vst [vmem:[#allocation2 + $0x10c] sm:$0xff] %v531_v19  ;;  %v840_v16 = vadd.f32 %v1651_v21, %v839_v11 }
 0x131   :  { %v530_v42 = vpack.c.bf16 %v352_v9, %v287_v7  ;;  %723 = vst [vmem:[#allocation2 + $0x184] sm:$0xf] %v707_v35 }
 0x132   :  { %869 = vst [vmem:[#allocation4 + $0x48] sm:$0xff] %v840_v16 }
 0x133   :  { %578 = vst [vmem:[#allocation2 + $0x104] sm:$0xff] %v530_v42  ;;  %v419_v1 = vpop.f32.mrf.mxu0  ;;  %v484_v46 = vpop.f32.mrf.mxu1 }
 0x134   :  { %v420_v33 = vadd.f32 %v419_v1, %v1635_v40  ;;  %v485_v34 = vadd.f32 %v484_v46, %v1638_v24  ;;  %722 = vst [vmem:[#allocation2 + $0x168] sm:$0xf] %v706_v49 }
 0x136   :  { %v354_v36 = vpop.f32.mrf.mxu3  ;;  %v534_v43 = vpack.c.bf16 %v485_v34, %v420_v33 }
 0x137   :  { %v355_v60 = vadd.f32 %v354_v36, %v1644_v41  ;;  %v842_v12 = vpop.f32.mrf.mxu2 }
 0x138   :  { %582 = vst [vmem:[#allocation2 + $0x128] sm:$0xff] %v534_v43  ;;  %v843_v44 = vadd.f32 %v1651_v21, %v842_v12  ;;  %v305_v12 = vadd.f32 %v1626_v37, %v1641_v25 }
 0x139   :  { %v533_v50 = vpack.c.bf16 %v355_v60, %v290_v47 }
 0x13a   :  { %870 = vst [vmem:[#allocation4 + $0x50] sm:$0xff] %v843_v44 }
 0x13b   :  { %581 = vst [vmem:[#allocation2 + $0x120] sm:$0xff] %v533_v50  ;;  %v422_v54 = vpop.f32.mrf.mxu0  ;;  %v487_v55 = vpop.f32.mrf.mxu1 }
 0x13c   :  { %v423_v20 = vadd.f32 %v422_v54, %v1635_v40  ;;  %v488_v56 = vadd.f32 %v487_v55, %v1638_v24 }
 0x13e   :  { %v357_v57 = vpop.f32.mrf.mxu3  ;;  %v537_v62 = vpack.c.bf16 %v488_v56, %v423_v20 }
 0x13f   :  { %v358_v59 = vadd.f32 %v357_v57, %v1644_v41  ;;  %v845_v61 = vpop.f32.mrf.mxu2 }
 0x140   :  { %585 = vst [vmem:[#allocation2 + $0x144] sm:$0xff] %v537_v62  ;;  %v846_v32 = vadd.f32 %v1651_v21, %v845_v61 }
 0x141   :  { %v536_v63 = vpack.c.bf16 %v358_v59, %v293_v58 }
 0x142   :  { %871 = vst [vmem:[#allocation4 + $0x58] sm:$0xff] %v846_v32 }
 0x143   :  { %584 = vst [vmem:[#allocation2 + $0x13c] sm:$0xff] %v536_v63  ;;  %v425_v0 = vpop.f32.mrf.mxu0  ;;  %v490_v4 = vpop.f32.mrf.mxu1 }
 0x144   :  { %v426_v22 = vadd.f32 %v425_v0, %v1635_v40  ;;  %v491_v2 = vadd.f32 %v490_v4, %v1638_v24 }
 0x146   :  { %v360_v51 = vpop.f32.mrf.mxu3  ;;  %v540_v5 = vpack.c.bf16 %v491_v2, %v426_v22 }
 0x147   :  { %v361_v19 = vadd.f32 %v360_v51, %v1644_v41  ;;  %v848_v6 = vpop.f32.mrf.mxu2 }
 0x148   :  { %588 = vst [vmem:[#allocation2 + $0x160] sm:$0xff] %v540_v5  ;;  %v849_v7 = vadd.f32 %v1651_v21, %v848_v6 }
 0x149   :  { %v539_v9 = vpack.c.bf16 %v361_v19, %v296_v38 }
 0x14a   :  { %872 = vst [vmem:[#allocation4 + $0x60] sm:$0xff] %v849_v7 }
 0x14b   :  { %587 = vst [vmem:[#allocation2 + $0x158] sm:$0xff] %v539_v9  ;;  %v428_v11 = vpop.f32.mrf.mxu0  ;;  %v493_v39 = vpop.f32.mrf.mxu1 }
 0x14c   :  { %v429_v14 = vadd.f32 %v428_v11, %v1635_v40  ;;  %v494_v15 = vadd.f32 %v493_v39, %v1638_v24 }
 0x14e   :  { %v363_v16 = vpop.f32.mrf.mxu3  ;;  %v543_v17 = vpack.c.bf16 %v494_v15, %v429_v14 }
 0x14f   :  { %v364_v18 = vadd.f32 %v363_v16, %v1644_v41  ;;  %v851_v8 = vpop.f32.mrf.mxu2 }
 0x150   :  { %591 = vst [vmem:[#allocation2 + $0x17c] sm:$0xff] %v543_v17  ;;  %v852_v42 = vadd.f32 %v1651_v21, %v851_v8 }
 0x151   :  { %v542_v26 = vpack.c.bf16 %v364_v18, %v299_v3 }
 0x152   :  { %873 = vst [vmem:[#allocation4 + $0x68] sm:$0xff] %v852_v42 }
 0x153   :  { %590 = vst [vmem:[#allocation2 + $0x174] sm:$0xff] %v542_v26  ;;  %v431_v27 = vpop.f32.mrf.mxu0  ;;  %v496_v29 = vpop.f32.mrf.mxu1 }
 0x154   :  { %v432_v30 = vadd.f32 %v431_v27, %v1635_v40  ;;  %v497_v1 = vadd.f32 %v496_v29, %v1638_v24 }
 0x156   :  { %v366_v46 = vpop.f32.mrf.mxu3  ;;  %v546_v31 = vpack.c.bf16 %v497_v1, %v432_v30 }
 0x157   :  { %v367_v33 = vadd.f32 %v366_v46, %v1644_v41  ;;  %v854_v34 = vpop.f32.mrf.mxu2 }
 0x158   :  { %594 = vst [vmem:[#allocation2 + $0x198] sm:$0xff] %v546_v31  ;;  %v855_v10 = vadd.f32 %v1651_v21, %v854_v34 }
 0x159   :  { %v545_v35 = vpack.c.bf16 %v367_v33, %v302_v13 }
 0x15a   :  { %874 = vst [vmem:[#allocation4 + $0x70] sm:$0xff] %v855_v10 }
 0x15b   :  { %593 = vst [vmem:[#allocation2 + $0x190] sm:$0xff] %v545_v35  ;;  %v434_v36 = vpop.f32.mrf.mxu0  ;;  %v499_v43 = vpop.f32.mrf.mxu1 }
 0x15c   :  { %v435_v28 = vadd.f32 %v434_v36, %v1635_v40  ;;  %v500_v45 = vadd.f32 %v499_v43, %v1638_v24 }
 0x15e   :  { %v369_v47 = vpop.f32.mrf.mxu3  ;;  %v549_v60 = vpack.c.bf16 %v500_v45, %v435_v28 }
 0x15f   :  { %v370_v53 = vadd.f32 %v369_v47, %v1644_v41  ;;  %v857_v48 = vpop.f32.mrf.mxu2 }
 0x160   :  { %597 = vst [vmem:[#allocation2 + $0x1b4] sm:$0xff] %v549_v60  ;;  %v858_v40 = vadd.f32 %v1651_v21, %v857_v48 }
 0x161   :  { %v548_v24 = vpack.c.bf16 %v370_v53, %v305_v12 }
 0x162   :  { %875 = vst [vmem:[#allocation4 + $0x78] sm:$0xff] %v858_v40 }
 0x163   :  { %596 = vst [vmem:[#allocation2 + $0x1ac] sm:$0xff] %v548_v24  ;;  %901 = dma.vmem_to_hbm [thread:$0]  %s894_s9, 2048, %s896_s11, [#allocation5], %s1133_s6, %s1133_s6, %s1134_s7  }
 0x164   :  { %888 = dma.vmem_to_hbm [thread:$0]  %s881_s27, 7168, %s883_s30, [#allocation3], %s1135_s12, %s1135_s12, %s1136_s13  }
 0x165   :  { %1126 = dma.done.wait [#allocation3], 7168  }
 0x166   :  { %1127 = vsyncadd [#allocation3], 4294960128 }
 0x167   :  { %1128 = dma.done.wait [#allocation5], 2048  }
 0x168   :  { %1129 = vsyncadd [#allocation5], 4294965248 }
 0x169   :  { %910 = vsyncpa [#allocation3], 1 }
 0x16a   :  { %911 = vsyncpa [#allocation5], 1 }

</bundles_post_ra>
